<compile_context>
chip_gen: v5e
topology: v5e:2x2
jax: 0.10.0
libtpu: 0.0.40
codegen_flags: <defaults>
</compile_context>

<pallas_src>
import jax
import jax.numpy as jnp
from jax.experimental import pallas as pl
from jax.experimental.pallas import tpu as pltpu


def _round_up(x, m):
    return (x + m - 1) // m * m


# ----------------------------------------------------------------------------
# Pallas kernels
# ----------------------------------------------------------------------------
def conv_pool_relu_kernel(p_ref, w_ref, b_ref, o_ref):
    """Fused conv (im2col matmul, transposed/lane-dense) + 2x2 maxpool + bias + relu.

    p_ref: (4, Kp, Tm) bf16  im2col patches; axis 0 = position in the 2x2 pool
                             window, Kp = padded contraction (kh*kw*ci),
                             Tm = lane-dense column tile over (n, ph, pw).
    w_ref: (Co, Kp)    bf16  conv weights (output-channel major).
    b_ref: (Co, 1)     f32   conv bias.
    o_ref: (Co, Tm)    bf16  pooled + relu'd activations (transposed layout).
    """
    w = w_ref[...]
    y = jnp.dot(w, p_ref[0], preferred_element_type=jnp.float32)
    for d in range(1, 4):                      # max-pool over the 2x2 window
        y = jnp.maximum(y, jnp.dot(w, p_ref[d], preferred_element_type=jnp.float32))
    # bias hoisted out of the pool loop: max(a+b, c+b) == max(a,c)+b
    o_ref[...] = jnp.maximum(y + b_ref[...], 0.0).astype(o_ref.dtype)


def mlp_head_kernel(x_ref, w1_ref, b1_ref, w2_ref, b2_ref, o_ref):
    """fc1 + relu + fc2 + log_softmax.  Dropout layers are identity (eval mode).

    fc1/fc2 output columns are zero-padded to 128; the padded fc2 bias lanes
    hold -1e30 so exp() underflows to 0 and the normalisation is unaffected.
    """
    h = jnp.dot(x_ref[...], w1_ref[...], preferred_element_type=jnp.float32) + b1_ref[...]
    h = jnp.maximum(h, 0.0).astype(w2_ref.dtype)          # bf16 operand for MXU
    logits = jnp.dot(h, w2_ref[...], preferred_element_type=jnp.float32) + b2_ref[...]
    m = jnp.max(logits, axis=1, keepdims=True)
    lse = jnp.log(jnp.sum(jnp.exp(logits - m), axis=1, keepdims=True)) + m
    o_ref[...] = logits - lse                              # log_softmax (dim=1)


# ----------------------------------------------------------------------------
# pallas_call wrappers
# ----------------------------------------------------------------------------
def _col_tiling(m, max_tile=1024):
    """Pad the lane-dense column count to 128 and pick a grid tile size."""
    m_pad = _round_up(m, 128)
    if m_pad <= max_tile:
        return m_pad, m_pad
    m_pad = _round_up(m_pad, max_tile)
    return m_pad, max_tile


def conv_pool_relu(patches, w, b):
    """patches: (4, K, M) bf16, w: (Co, K) bf16, b: (Co,) f32 -> (Co, M) bf16."""
    _, k, m = patches.shape
    co = w.shape[0]
    k_pad = _round_up(k, 32)
    m_pad, tile_m = _col_tiling(m)

    patches = jnp.pad(patches, ((0, 0), (0, k_pad - k), (0, m_pad - m)))
    w = jnp.pad(w, ((0, 0), (0, k_pad - k)))
    b = b.reshape(co, 1).astype(jnp.float32)

    out = pl.pallas_call(
        conv_pool_relu_kernel,
        grid=(m_pad // tile_m,),
        in_specs=[
            pl.BlockSpec((4, k_pad, tile_m), lambda i: (0, 0, i)),
            pl.BlockSpec((co, k_pad), lambda i: (0, 0)),
            pl.BlockSpec((co, 1), lambda i: (0, 0)),
        ],
        out_specs=pl.BlockSpec((co, tile_m), lambda i: (0, i)),
        out_shape=jax.ShapeDtypeStruct((co, m_pad), jnp.bfloat16),
        compiler_params=pltpu.CompilerParams(dimension_semantics=("parallel",)),
    )(patches, w, b)
    return out[:, :m]


def mlp_head(feat, w1, b1, w2, b2):
    """feat: (N, 320) bf16 -> log_softmax logits (N, 10) f32."""
    n, k1 = feat.shape
    h_pad, c_pad = 128, 128                     # padded fc1 / fc2 output widths
    n_pad = _round_up(n, 8)
    tile_r = min(256, n_pad)
    n_pad = _round_up(n_pad, tile_r)

    feat = jnp.pad(feat, ((0, n_pad - n), (0, 0)))
    w1p = jnp.pad(w1.astype(jnp.bfloat16), ((0, 0), (0, h_pad - w1.shape[1])))
    b1p = jnp.pad(b1.astype(jnp.float32), (0, h_pad - b1.shape[0])).reshape(1, h_pad)
    w2p = jnp.pad(w2.astype(jnp.bfloat16),
                  ((0, h_pad - w2.shape[0]), (0, c_pad - w2.shape[1])))
    b2p = jnp.full((1, c_pad), -1e30, jnp.float32).at[0, :b2.shape[0]].set(
        b2.astype(jnp.float32))

    out = pl.pallas_call(
        mlp_head_kernel,
        grid=(n_pad // tile_r,),
        in_specs=[
            pl.BlockSpec((tile_r, k1), lambda i: (i, 0)),
            pl.BlockSpec((k1, h_pad), lambda i: (0, 0)),
            pl.BlockSpec((1, h_pad), lambda i: (0, 0)),
            pl.BlockSpec((h_pad, c_pad), lambda i: (0, 0)),
            pl.BlockSpec((1, c_pad), lambda i: (0, 0)),
        ],
        out_specs=pl.BlockSpec((tile_r, c_pad), lambda i: (i, 0)),
        out_shape=jax.ShapeDtypeStruct((n_pad, c_pad), jnp.float32),
        compiler_params=pltpu.CompilerParams(dimension_semantics=("parallel",)),
    )(feat, w1p, b1p, w2p, b2p)
    return out[:n, :w2.shape[1]]


# ----------------------------------------------------------------------------
# Plain-JAX glue: transposed im2col (grouped by pool position), weight prep
# ----------------------------------------------------------------------------
def im2col_pooled_T(x_nhwc, k=5):
    """(N,H,W,C) -> (4, k*k*C, N*PH*PW); K order (ki,kj,ci), columns (n,ph,pw)."""
    n, h, w, c = x_nhwc.shape
    oh, ow = h - k + 1, w - k + 1
    ph, pw = oh // 2, ow // 2
    cols = jnp.stack(
        [x_nhwc[:, ki:ki + oh, kj:kj + ow, :] for ki in range(k) for kj in range(k)],
        axis=0,
    )                                               # (k*k, N, OH, OW, C)
    cols = cols.reshape(k * k, n, ph, 2, pw, 2, c)
    cols = cols.transpose(3, 5, 0, 6, 1, 2, 4)      # (di, dj, k*k, C, N, PH, PW)
    return cols.reshape(4, k * k * c, n * ph * pw), (n, ph, pw)


def torch_conv_weight_to_matrix_T(w_oihw):
    """(Co, Ci, KH, KW) torch layout -> (Co, KH*KW*Ci) matching im2col K order."""
    co, ci, kh, kw = w_oihw.shape
    return jnp.transpose(w_oihw, (0, 2, 3, 1)).reshape(co, kh * kw * ci)


def net_forward(x_nchw, params):
    (c1w, c1b, c2w, c2b, f1w, f1b, f2w, f2b) = params
    x = jnp.transpose(x_nchw, (0, 2, 3, 1)).astype(jnp.bfloat16)   # NCHW -> NHWC

    # conv1 -> maxpool2 -> relu   (output in transposed layout (10, N*12*12))
    cols1, (n, ph1, pw1) = im2col_pooled_T(x, 5)
    y1t = conv_pool_relu(
        cols1, torch_conv_weight_to_matrix_T(c1w).astype(jnp.bfloat16), c1b)
    co1 = c1w.shape[0]
    x2 = y1t.reshape(co1, n, ph1, pw1).transpose(1, 2, 3, 0)       # (N,12,12,10)

    # conv2 -> (Dropout2d: identity, eval) -> maxpool2 -> relu
    # TODO(synk): Dropout2d / F.dropout modeled as identity (eval-mode semantics).
    cols2, (n, ph2, pw2) = im2col_pooled_T(x2, 5)
    y2t = conv_pool_relu(
        cols2, torch_conv_weight_to_matrix_T(c2w).astype(jnp.bfloat16), c2b)
    co2 = c2w.shape[0]

    # flatten in torch NCHW order: (N, 20, 4, 4) -> (N, 320); the transposed
    # (Co, n, ph, pw) layout already has (c, ph, pw) contiguous per image.
    feat = (y2t.reshape(co2, n, ph2, pw2)
            .transpose(1, 0, 2, 3)
            .reshape(n, co2 * ph2 * pw2)
            .astype(jnp.bfloat16))

    # fc1 -> relu -> (dropout: identity) -> fc2 -> log_softmax
    return mlp_head(feat, f1w, f1b, f2w, f2b)


# ----------------------------------------------------------------------------
# Main
# ----------------------------------------------------------------------------
if __name__ == "__main__":
    key = jax.random.PRNGKey(0)
    ks = jax.random.split(key, 9)

    # Deterministic synthetic parameters (shapes from Net.__init__).
    conv1_w = 0.1 * jax.random.normal(ks[0], (10, 1, 5, 5), jnp.float32)
    conv1_b = 0.1 * jax.random.normal(ks[1], (10,), jnp.float32)
    conv2_w = 0.1 * jax.random.normal(ks[2], (20, 10, 5, 5), jnp.float32)
    conv2_b = 0.1 * jax.random.normal(ks[3], (20,), jnp.float32)
    fc1_w = 0.05 * jax.random.normal(ks[4], (320, 50), jnp.float32)   # (in, out)
    fc1_b = 0.05 * jax.random.normal(ks[5], (50,), jnp.float32)
    fc2_w = 0.05 * jax.random.normal(ks[6], (50, 10), jnp.float32)    # (in, out)
    fc2_b = 0.05 * jax.random.normal(ks[7], (10,), jnp.float32)
    params = (conv1_w, conv1_b, conv2_w, conv2_b, fc1_w, fc1_b, fc2_w, fc2_b)

    # Input: batch=2, 1 channel, 28x28 (required so flatten yields 320 feats).
    x = jax.random.normal(ks[8], (2, 1, 28, 28), jnp.float32)

    out = jax.jit(net_forward)(x, params)
    out = jax.block_until_ready(out)

    assert out.shape == (2, 10) and out.dtype == jnp.float32
    # log_softmax rows must (numerically) sum to 1 in probability space
    assert bool(jnp.all(jnp.abs(jnp.sum(jnp.exp(out), axis=1) - 1.0) < 1e-4))
    print("KERNEL_OK")
</pallas_src>

<mosaic_0001>
module attributes {stable_mosaic.version = 11 : i64} {
  func.func @conv_pool_relu_kernel(%arg0: i32, %arg1: memref<4x32x384xbf16, #tpu.memory_space<vmem>>, %arg2: memref<10x32xbf16, #tpu.memory_space<vmem>>, %arg3: memref<10x1xf32, #tpu.memory_space<vmem>>, %arg4: memref<10x384xbf16, #tpu.memory_space<vmem>>) attributes {dimension_semantics = [#tpu.dimension_semantics<parallel>], iteration_bounds = array<i64: 1>, scalar_prefetch = 0 : i64, scratch_operands = 0 : i64, tpu.core_type = #tpu.core_type<tc>, window_params = [{transform_indices = @transform_0, window_bounds = array<i64: 4, 32, 384>}, {pipeline_mode = #tpu.pipeline_mode<synchronous>, transform_indices = @transform_1, window_bounds = array<i64: 10, 32>}, {pipeline_mode = #tpu.pipeline_mode<synchronous>, transform_indices = @transform_2, window_bounds = array<i64: 10, 1>}, {transform_indices = @transform_3, window_bounds = array<i64: 10, 384>}]} {
    %c0 = arith.constant 0 : index
    %c0_0 = arith.constant 0 : index
    %0 = vector.load %arg2[%c0, %c0_0] : memref<10x32xbf16, #tpu.memory_space<vmem>>, vector<10x32xbf16>
    %c0_1 = arith.constant 0 : index
    %c0_2 = arith.constant 0 : index
    %c0_3 = arith.constant 0 : index
    %1 = vector.load %arg1[%c0_1, %c0_2, %c0_3] : memref<4x32x384xbf16, #tpu.memory_space<vmem>>, vector<1x32x384xbf16>
    %2 = vector.shape_cast %1 : vector<1x32x384xbf16> to vector<32x384xbf16>
    %cst = arith.constant dense<0.000000e+00> : vector<10x384xf32>
    %3 = tpu.matmul %0, %2, %cst {dimension_numbers = #tpu.dot_dimension_numbers<[1], [0], [0], [1], [0, 0, 1, 1], [], []>} : vector<10x32xbf16>, vector<32x384xbf16>, vector<10x384xf32> -> vector<10x384xf32>
    %c1 = arith.constant 1 : index
    %c0_4 = arith.constant 0 : index
    %c0_5 = arith.constant 0 : index
    %4 = vector.load %arg1[%c1, %c0_4, %c0_5] : memref<4x32x384xbf16, #tpu.memory_space<vmem>>, vector<1x32x384xbf16>
    %5 = vector.shape_cast %4 : vector<1x32x384xbf16> to vector<32x384xbf16>
    %cst_6 = arith.constant dense<0.000000e+00> : vector<10x384xf32>
    %6 = tpu.matmul %0, %5, %cst_6 {dimension_numbers = #tpu.dot_dimension_numbers<[1], [0], [0], [1], [0, 0, 1, 1], [], []>} : vector<10x32xbf16>, vector<32x384xbf16>, vector<10x384xf32> -> vector<10x384xf32>
    %7 = arith.maximumf %3, %6 : vector<10x384xf32>
    %c2 = arith.constant 2 : index
    %c0_7 = arith.constant 0 : index
    %c0_8 = arith.constant 0 : index
    %8 = vector.load %arg1[%c2, %c0_7, %c0_8] : memref<4x32x384xbf16, #tpu.memory_space<vmem>>, vector<1x32x384xbf16>
    %9 = vector.shape_cast %8 : vector<1x32x384xbf16> to vector<32x384xbf16>
    %cst_9 = arith.constant dense<0.000000e+00> : vector<10x384xf32>
    %10 = tpu.matmul %0, %9, %cst_9 {dimension_numbers = #tpu.dot_dimension_numbers<[1], [0], [0], [1], [0, 0, 1, 1], [], []>} : vector<10x32xbf16>, vector<32x384xbf16>, vector<10x384xf32> -> vector<10x384xf32>
    %11 = arith.maximumf %7, %10 : vector<10x384xf32>
    %c3 = arith.constant 3 : index
    %c0_10 = arith.constant 0 : index
    %c0_11 = arith.constant 0 : index
    %12 = vector.load %arg1[%c3, %c0_10, %c0_11] : memref<4x32x384xbf16, #tpu.memory_space<vmem>>, vector<1x32x384xbf16>
    %13 = vector.shape_cast %12 : vector<1x32x384xbf16> to vector<32x384xbf16>
    %cst_12 = arith.constant dense<0.000000e+00> : vector<10x384xf32>
    %14 = tpu.matmul %0, %13, %cst_12 {dimension_numbers = #tpu.dot_dimension_numbers<[1], [0], [0], [1], [0, 0, 1, 1], [], []>} : vector<10x32xbf16>, vector<32x384xbf16>, vector<10x384xf32> -> vector<10x384xf32>
    %15 = arith.maximumf %11, %14 : vector<10x384xf32>
    %c0_13 = arith.constant 0 : index
    %c0_14 = arith.constant 0 : index
    %16 = vector.load %arg3[%c0_13, %c0_14] : memref<10x1xf32, #tpu.memory_space<vmem>>, vector<10x1xf32>
    %17 = vector.broadcast %16 : vector<10x1xf32> to vector<10x384xf32>
    %18 = arith.addf %15, %17 : vector<10x384xf32>
    %cst_15 = arith.constant 0.000000e+00 : f32
    %19 = vector.broadcast %cst_15 : f32 to vector<10x384xf32>
    %20 = arith.maximumf %18, %19 : vector<10x384xf32>
    %21 = arith.truncf %20 : vector<10x384xf32> to vector<10x384xbf16>
    %c0_16 = arith.constant 0 : index
    %c0_17 = arith.constant 0 : index
    %22 = vector.load %arg4[%c0_16, %c0_17] : memref<10x384xbf16, #tpu.memory_space<vmem>>, vector<10x384xbf16>
    tpu.vector_store %arg4[%c0_16, %c0_17], %21 {strides = array<i32>} : memref<10x384xbf16, #tpu.memory_space<vmem>>, vector<10x384xbf16>,
    return
  }
  func.func @transform_0(%arg0: i32) -> (i32, i32, i32) {
    %c0_i32 = arith.constant 0 : i32
    %c0_i32_0 = arith.constant 0 : i32
    %c0_i32_1 = arith.constant 0 : i32
    return %c0_i32, %c0_i32_0, %arg0 : i32, i32, i32
  }
  func.func @transform_1(%arg0: i32) -> (i32, i32) {
    %c0_i32 = arith.constant 0 : i32
    %c0_i32_0 = arith.constant 0 : i32
    %c0_i32_1 = arith.constant 0 : i32
    return %c0_i32, %c0_i32_0 : i32, i32
  }
  func.func @transform_2(%arg0: i32) -> (i32, i32) {
    %c0_i32 = arith.constant 0 : i32
    %c0_i32_0 = arith.constant 0 : i32
    %c0_i32_1 = arith.constant 0 : i32
    return %c0_i32, %c0_i32_0 : i32, i32
  }
  func.func @transform_3(%arg0: i32) -> (i32, i32) {
    %c0_i32 = arith.constant 0 : i32
    %c0_i32_0 = arith.constant 0 : i32
    return %c0_i32, %arg0 : i32, i32
  }
}

module attributes {stable_mosaic.version = 11 : i64} {
  func.func @conv_pool_relu_kernel(%arg0: i32, %arg1: memref<4x256x128xbf16, #tpu.memory_space<vmem>>, %arg2: memref<20x256xbf16, #tpu.memory_space<vmem>>, %arg3: memref<20x1xf32, #tpu.memory_space<vmem>>, %arg4: memref<20x128xbf16, #tpu.memory_space<vmem>>) attributes {dimension_semantics = [#tpu.dimension_semantics<parallel>], iteration_bounds = array<i64: 1>, scalar_prefetch = 0 : i64, scratch_operands = 0 : i64, tpu.core_type = #tpu.core_type<tc>, window_params = [{transform_indices = @transform_0, window_bounds = array<i64: 4, 256, 128>}, {pipeline_mode = #tpu.pipeline_mode<synchronous>, transform_indices = @transform_1, window_bounds = array<i64: 20, 256>}, {pipeline_mode = #tpu.pipeline_mode<synchronous>, transform_indices = @transform_2, window_bounds = array<i64: 20, 1>}, {transform_indices = @transform_3, window_bounds = array<i64: 20, 128>}]} {
    %c0 = arith.constant 0 : index
    %c0_0 = arith.constant 0 : index
    %0 = vector.load %arg2[%c0, %c0_0] : memref<20x256xbf16, #tpu.memory_space<vmem>>, vector<20x256xbf16>
    %c0_1 = arith.constant 0 : index
    %c0_2 = arith.constant 0 : index
    %c0_3 = arith.constant 0 : index
    %1 = vector.load %arg1[%c0_1, %c0_2, %c0_3] : memref<4x256x128xbf16, #tpu.memory_space<vmem>>, vector<1x256x128xbf16>
    %2 = vector.shape_cast %1 : vector<1x256x128xbf16> to vector<256x128xbf16>
    %cst = arith.constant dense<0.000000e+00> : vector<20x128xf32>
    %3 = tpu.matmul %0, %2, %cst {dimension_numbers = #tpu.dot_dimension_numbers<[1], [0], [0], [1], [0, 0, 1, 1], [], []>} : vector<20x256xbf16>, vector<256x128xbf16>, vector<20x128xf32> -> vector<20x128xf32>
    %c1 = arith.constant 1 : index
    %c0_4 = arith.constant 0 : index
    %c0_5 = arith.constant 0 : index
    %4 = vector.load %arg1[%c1, %c0_4, %c0_5] : memref<4x256x128xbf16, #tpu.memory_space<vmem>>, vector<1x256x128xbf16>
    %5 = vector.shape_cast %4 : vector<1x256x128xbf16> to vector<256x128xbf16>
    %cst_6 = arith.constant dense<0.000000e+00> : vector<20x128xf32>
    %6 = tpu.matmul %0, %5, %cst_6 {dimension_numbers = #tpu.dot_dimension_numbers<[1], [0], [0], [1], [0, 0, 1, 1], [], []>} : vector<20x256xbf16>, vector<256x128xbf16>, vector<20x128xf32> -> vector<20x128xf32>
    %7 = arith.maximumf %3, %6 : vector<20x128xf32>
    %c2 = arith.constant 2 : index
    %c0_7 = arith.constant 0 : index
    %c0_8 = arith.constant 0 : index
    %8 = vector.load %arg1[%c2, %c0_7, %c0_8] : memref<4x256x128xbf16, #tpu.memory_space<vmem>>, vector<1x256x128xbf16>
    %9 = vector.shape_cast %8 : vector<1x256x128xbf16> to vector<256x128xbf16>
    %cst_9 = arith.constant dense<0.000000e+00> : vector<20x128xf32>
    %10 = tpu.matmul %0, %9, %cst_9 {dimension_numbers = #tpu.dot_dimension_numbers<[1], [0], [0], [1], [0, 0, 1, 1], [], []>} : vector<20x256xbf16>, vector<256x128xbf16>, vector<20x128xf32> -> vector<20x128xf32>
    %11 = arith.maximumf %7, %10 : vector<20x128xf32>
    %c3 = arith.constant 3 : index
    %c0_10 = arith.constant 0 : index
    %c0_11 = arith.constant 0 : index
    %12 = vector.load %arg1[%c3, %c0_10, %c0_11] : memref<4x256x128xbf16, #tpu.memory_space<vmem>>, vector<1x256x128xbf16>
    %13 = vector.shape_cast %12 : vector<1x256x128xbf16> to vector<256x128xbf16>
    %cst_12 = arith.constant dense<0.000000e+00> : vector<20x128xf32>
    %14 = tpu.matmul %0, %13, %cst_12 {dimension_numbers = #tpu.dot_dimension_numbers<[1], [0], [0], [1], [0, 0, 1, 1], [], []>} : vector<20x256xbf16>, vector<256x128xbf16>, vector<20x128xf32> -> vector<20x128xf32>
    %15 = arith.maximumf %11, %14 : vector<20x128xf32>
    %c0_13 = arith.constant 0 : index
    %c0_14 = arith.constant 0 : index
    %16 = vector.load %arg3[%c0_13, %c0_14] : memref<20x1xf32, #tpu.memory_space<vmem>>, vector<20x1xf32>
    %17 = vector.broadcast %16 : vector<20x1xf32> to vector<20x128xf32>
    %18 = arith.addf %15, %17 : vector<20x128xf32>
    %cst_15 = arith.constant 0.000000e+00 : f32
    %19 = vector.broadcast %cst_15 : f32 to vector<20x128xf32>
    %20 = arith.maximumf %18, %19 : vector<20x128xf32>
    %21 = arith.truncf %20 : vector<20x128xf32> to vector<20x128xbf16>
    %c0_16 = arith.constant 0 : index
    %c0_17 = arith.constant 0 : index
    %22 = vector.load %arg4[%c0_16, %c0_17] : memref<20x128xbf16, #tpu.memory_space<vmem>>, vector<20x128xbf16>
    tpu.vector_store %arg4[%c0_16, %c0_17], %21 {strides = array<i32>} : memref<20x128xbf16, #tpu.memory_space<vmem>>, vector<20x128xbf16>,
    return
  }
  func.func @transform_0(%arg0: i32) -> (i32, i32, i32) {
    %c0_i32 = arith.constant 0 : i32
    %c0_i32_0 = arith.constant 0 : i32
    %c0_i32_1 = arith.constant 0 : i32
    return %c0_i32, %c0_i32_0, %arg0 : i32, i32, i32
  }
  func.func @transform_1(%arg0: i32) -> (i32, i32) {
    %c0_i32 = arith.constant 0 : i32
    %c0_i32_0 = arith.constant 0 : i32
    %c0_i32_1 = arith.constant 0 : i32
    return %c0_i32, %c0_i32_0 : i32, i32
  }
  func.func @transform_2(%arg0: i32) -> (i32, i32) {
    %c0_i32 = arith.constant 0 : i32
    %c0_i32_0 = arith.constant 0 : i32
    %c0_i32_1 = arith.constant 0 : i32
    return %c0_i32, %c0_i32_0 : i32, i32
  }
  func.func @transform_3(%arg0: i32) -> (i32, i32) {
    %c0_i32 = arith.constant 0 : i32
    %c0_i32_0 = arith.constant 0 : i32
    return %c0_i32, %arg0 : i32, i32
  }
}

module attributes {stable_mosaic.version = 11 : i64} {
  func.func @mlp_head_kernel(%arg0: i32, %arg1: memref<8x320xbf16, #tpu.memory_space<vmem>>, %arg2: memref<320x128xbf16, #tpu.memory_space<vmem>>, %arg3: memref<1x128xf32, #tpu.memory_space<vmem>>, %arg4: memref<128x128xbf16, #tpu.memory_space<vmem>>, %arg5: memref<1x128xf32, #tpu.memory_space<vmem>>, %arg6: memref<8x128xf32, #tpu.memory_space<vmem>>) attributes {dimension_semantics = [#tpu.dimension_semantics<parallel>], iteration_bounds = array<i64: 1>, scalar_prefetch = 0 : i64, scratch_operands = 0 : i64, tpu.core_type = #tpu.core_type<tc>, window_params = [{transform_indices = @transform_0, window_bounds = array<i64: 8, 320>}, {pipeline_mode = #tpu.pipeline_mode<synchronous>, transform_indices = @transform_1, window_bounds = array<i64: 320, 128>}, {pipeline_mode = #tpu.pipeline_mode<synchronous>, transform_indices = @transform_2, window_bounds = array<i64: 1, 128>}, {pipeline_mode = #tpu.pipeline_mode<synchronous>, transform_indices = @transform_3, window_bounds = array<i64: 128, 128>}, {pipeline_mode = #tpu.pipeline_mode<synchronous>, transform_indices = @transform_4, window_bounds = array<i64: 1, 128>}, {transform_indices = @transform_5, window_bounds = array<i64: 8, 128>}]} {
    %c0 = arith.constant 0 : index
    %c0_0 = arith.constant 0 : index
    %0 = vector.load %arg1[%c0, %c0_0] : memref<8x320xbf16, #tpu.memory_space<vmem>>, vector<8x320xbf16>
    %c0_1 = arith.constant 0 : index
    %c0_2 = arith.constant 0 : index
    %1 = vector.load %arg2[%c0_1, %c0_2] : memref<320x128xbf16, #tpu.memory_space<vmem>>, vector<320x128xbf16>
    %cst = arith.constant dense<0.000000e+00> : vector<8x128xf32>
    %2 = tpu.matmul %0, %1, %cst {dimension_numbers = #tpu.dot_dimension_numbers<[1], [0], [0], [1], [0, 0, 1, 1], [], []>} : vector<8x320xbf16>, vector<320x128xbf16>, vector<8x128xf32> -> vector<8x128xf32>
    %c0_3 = arith.constant 0 : index
    %c0_4 = arith.constant 0 : index
    %3 = vector.load %arg3[%c0_3, %c0_4] : memref<1x128xf32, #tpu.memory_space<vmem>>, vector<1x128xf32>
    %4 = vector.broadcast %3 : vector<1x128xf32> to vector<8x128xf32>
    %5 = arith.addf %2, %4 : vector<8x128xf32>
    %cst_5 = arith.constant 0.000000e+00 : f32
    %6 = vector.broadcast %cst_5 : f32 to vector<8x128xf32>
    %7 = arith.maximumf %5, %6 : vector<8x128xf32>
    %8 = arith.truncf %7 : vector<8x128xf32> to vector<8x128xbf16>
    %c0_6 = arith.constant 0 : index
    %c0_7 = arith.constant 0 : index
    %9 = vector.load %arg4[%c0_6, %c0_7] : memref<128x128xbf16, #tpu.memory_space<vmem>>, vector<128x128xbf16>
    %cst_8 = arith.constant dense<0.000000e+00> : vector<8x128xf32>
    %10 = tpu.matmul %8, %9, %cst_8 {dimension_numbers = #tpu.dot_dimension_numbers<[1], [0], [0], [1], [0, 0, 1, 1], [], []>} : vector<8x128xbf16>, vector<128x128xbf16>, vector<8x128xf32> -> vector<8x128xf32>
    %c0_9 = arith.constant 0 : index
    %c0_10 = arith.constant 0 : index
    %11 = vector.load %arg5[%c0_9, %c0_10] : memref<1x128xf32, #tpu.memory_space<vmem>>, vector<1x128xf32>
    %12 = vector.broadcast %11 : vector<1x128xf32> to vector<8x128xf32>
    %13 = arith.addf %10, %12 : vector<8x128xf32>
    %cst_11 = arith.constant dense<0xFF800000> : vector<8xf32>
    %14 = vector.multi_reduction <maximumf>, %13, %cst_11 [1] : vector<8x128xf32> to vector<8xf32>
    %15 = vector.shape_cast %14 : vector<8xf32> to vector<8x1xf32>
    %16 = vector.broadcast %15 : vector<8x1xf32> to vector<8x128xf32>
    %17 = arith.subf %13, %16 : vector<8x128xf32>
    %18 = math.exp %17 : vector<8x128xf32>
    %cst_12 = arith.constant dense<0.000000e+00> : vector<8xf32>
    %19 = vector.multi_reduction <add>, %18, %cst_12 [1] : vector<8x128xf32> to vector<8xf32>
    %20 = vector.shape_cast %19 : vector<8xf32> to vector<8x1xf32>
    %21 = math.log %20 : vector<8x1xf32>
    %22 = arith.addf %21, %15 : vector<8x1xf32>
    %23 = vector.broadcast %22 : vector<8x1xf32> to vector<8x128xf32>
    %24 = arith.subf %13, %23 : vector<8x128xf32>
    %c0_13 = arith.constant 0 : index
    %c0_14 = arith.constant 0 : index
    %25 = vector.load %arg6[%c0_13, %c0_14] : memref<8x128xf32, #tpu.memory_space<vmem>>, vector<8x128xf32>
    tpu.vector_store %arg6[%c0_13, %c0_14], %24 {strides = array<i32>} : memref<8x128xf32, #tpu.memory_space<vmem>>, vector<8x128xf32>,
    return
  }
  func.func @transform_0(%arg0: i32) -> (i32, i32) {
    %c0_i32 = arith.constant 0 : i32
    %c0_i32_0 = arith.constant 0 : i32
    return %arg0, %c0_i32 : i32, i32
  }
  func.func @transform_1(%arg0: i32) -> (i32, i32) {
    %c0_i32 = arith.constant 0 : i32
    %c0_i32_0 = arith.constant 0 : i32
    %c0_i32_1 = arith.constant 0 : i32
    return %c0_i32, %c0_i32_0 : i32, i32
  }
  func.func @transform_2(%arg0: i32) -> (i32, i32) {
    %c0_i32 = arith.constant 0 : i32
    %c0_i32_0 = arith.constant 0 : i32
    %c0_i32_1 = arith.constant 0 : i32
    return %c0_i32, %c0_i32_0 : i32, i32
  }
  func.func @transform_3(%arg0: i32) -> (i32, i32) {
    %c0_i32 = arith.constant 0 : i32
    %c0_i32_0 = arith.constant 0 : i32
    %c0_i32_1 = arith.constant 0 : i32
    return %c0_i32, %c0_i32_0 : i32, i32
  }
  func.func @transform_4(%arg0: i32) -> (i32, i32) {
    %c0_i32 = arith.constant 0 : i32
    %c0_i32_0 = arith.constant 0 : i32
    %c0_i32_1 = arith.constant 0 : i32
    return %c0_i32, %c0_i32_0 : i32, i32
  }
  func.func @transform_5(%arg0: i32) -> (i32, i32) {
    %c0_i32 = arith.constant 0 : i32
    %c0_i32_0 = arith.constant 0 : i32
    return %arg0, %c0_i32 : i32, i32
  }
}

</mosaic_0001>

<bundles_post_ra>
// kernel: net_forward.3
= control target key start
LH: loop header
LB: loop body
LE: loop exit
PB: predicated region body
PF: predicated region fallthrough
CT: control target
= control target key end

     0   :  { %vm62_vm0 = vcmask 261120   ;;  %s789_s0 = inlined_call_operand.vmem [shape: bf16[4,32,384], index: 0, kind: input, shape index: {}]   ;;  %s790_s1 = inlined_call_operand.vmem [shape: bf16[10,32], index: 1, kind: input, shape index: {}]   ;;  %s791_s2 = inlined_call_operand.vmem [shape: f32[10,1], index: 2, kind: input, shape index: {}]   ;;  %s792_s3 = inlined_call_operand.vmem [shape: bf16[10,384], index: 3, kind: output, shape index: {}]  }
   0x1   :  { %v429_v0 = vld [vmem:[%s789_s0 + $0x18] sm:$0xf]  ;;  %v552_v1 = vld [vmem:[%s789_s0 + $0x20] sm:$0xf0]  ;;  %v551_v2 = vld [vmem:[%s789_s0 + $0x1c] sm:$0xf] }
   0x2   :  { %v430_v3 = vor.u32 %v552_v1, %v429_v0  ;;  %v431_v4 = vld [vmem:[%s789_s0 + $0x24] sm:$0xf0]  ;;  %v437_v5 = vld [vmem:[%s789_s0 + $0x20] sm:$0xf]  ;;  %v553_v6 = vld [vmem:[%s789_s0 + $0x28] sm:$0xf0] }
   0x3   :  { %v434_v7 = vor.u32 %v551_v2, %v431_v4  ;;  %v438_v8 = vor.u32 %v553_v6, %v437_v5  ;;  %v464_v9 = vld [vmem:[%s789_s0 + $0x48] sm:$0xf]  ;;  %v558_v10 = vld [vmem:[%s789_s0 + $0x50] sm:$0xf0]  ;;  %v417_v11 = vld [vmem:[%s789_s0] sm:$0xf] }
   0x4   :  { %72 = vmatpush.bf16.msra.mxu0 %v430_v3  ;;  %v465_v12 = vor.u32 %v558_v10, %v464_v9  ;;  %v549_v13 = vld [vmem:[%s789_s0 + $0x8] sm:$0xf0]  ;;  %v548_v14 = vld [vmem:[%s789_s0 + $0x4] sm:$0xf]  ;;  %v419_v15 = vld [vmem:[%s789_s0 + $0xc] sm:$0xf0] }
   0x5   :  { %86 = vmatpush.bf16.msra.mxu1 %v434_v7  ;;  %100 = vmatpush.bf16.msra.mxu2 %v438_v8  ;;  %v418_v16 = vor.u32 %v549_v13, %v417_v11  ;;  %v422_v17 = vor.u32 %v548_v14, %v419_v15  ;;  %v425_v18 = vld [vmem:[%s789_s0 + $0x8] sm:$0xf]  ;;  %v550_v19 = vld [vmem:[%s789_s0 + $0x10] sm:$0xf0]  ;;  %v452_v20 = vld [vmem:[%s789_s0 + $0x30] sm:$0xf] }
   0x6   :  { %155 = vmatpush.bf16.msra.mxu3 %v465_v12  ;;  %v426_v21 = vor.u32 %v550_v19, %v425_v18  ;;  %v555_v22 = vld [vmem:[%s789_s0 + $0x38] sm:$0xf0]  ;;  %v413_v23 = vld [vmem:[%s790_s1] sm:$0xf]  ;;  %v547_v24 = vld [vmem:[%s790_s1] sm:$0x10] }
   0x7   :  { %v453_v25 = vor.u32 %v555_v22, %v452_v20  ;;  %v649_v26 = vor.u32 %v547_v24, %v413_v23  ;;  %v499_v27 = vld [vmem:[%s789_s0 + $0x78] sm:$0xf]  ;;  %v564_v28 = vld [vmem:[%s789_s0 + $0x80] sm:$0xf0]  ;;  %v563_v29 = vld [vmem:[%s789_s0 + $0x7c] sm:$0xf] }
   0x8   :  { %73 = vmatpush.bf16.msra.mxu0 %v418_v16  ;;  %v500_v30 = vor.u32 %v564_v28, %v499_v27  ;;  %v501_v31 = vld [vmem:[%s789_s0 + $0x84] sm:$0xf0]  ;;  %v557_v32 = vld [vmem:[%s789_s0 + $0x4c] sm:$0xf]  ;;  %v466_v33 = vld [vmem:[%s789_s0 + $0x54] sm:$0xf0] }
   0x9   :  { %87 = vmatpush.bf16.msra.mxu1 %v422_v17  ;;  %101 = vmatpush.bf16.msra.mxu2 %v426_v21  ;;  %v504_v34 = vor.u32 %v563_v29, %v501_v31  ;;  %v469_v35 = vor.u32 %v557_v32, %v466_v33  ;;  %v472_v36 = vld [vmem:[%s789_s0 + $0x50] sm:$0xf]  ;;  %v559_v37 = vld [vmem:[%s789_s0 + $0x58] sm:$0xf0]  ;;  %v487_v38 = vld [vmem:[%s789_s0 + $0x60] sm:$0xf] }
   0xa   :  { %156 = vmatpush.bf16.msra.mxu3 %v453_v25  ;;  %v473_v39 = vor.u32 %v559_v37, %v472_v36  ;;  %v561_v40 = vld [vmem:[%s789_s0 + $0x68] sm:$0xf0]  ;;  %v560_v41 = vld [vmem:[%s789_s0 + $0x64] sm:$0xf]  ;;  %v489_v42 = vld [vmem:[%s789_s0 + $0x6c] sm:$0xf0] }
   0xb   :  { %439 = vmatmul.msk.bf16.vlgmr.msra.gmra.mxu0 %vm62_vm0, %v649_v26  ;;  %v488_v43 = vor.u32 %v561_v40, %v487_v38  ;;  %v492_v44 = vor.u32 %v560_v41, %v489_v42  ;;  %v554_v45 = vld [vmem:[%s789_s0 + $0x34] sm:$0xf]  ;;  %v454_v46 = vld [vmem:[%s789_s0 + $0x3c] sm:$0xf0]  ;;  %v460_v47 = vld [vmem:[%s789_s0 + $0x38] sm:$0xf] }
   0xc   :  { %440 = vmatmul.msk.bf16.vlgmr.msra.gmra.mxu1 %vm62_vm0, %v649_v26  ;;  %441 = vmatmul.msk.bf16.vlgmr.msra.gmra.mxu2 %vm62_vm0, %v649_v26  ;;  %v556_v48 = vld [vmem:[%s789_s0 + $0x40] sm:$0xf0]  ;;  %v569_v49 = vld [vmem:[%s789_s0 + $0xac] sm:$0xf]  ;;  %v536_v50 = vld [vmem:[%s789_s0 + $0xb4] sm:$0xf0]  ;;  %v457_v51 = vor.u32 %v554_v45, %v454_v46 }
   0xd   :  { %244 = vmatpush.bf16.msrb.mxu2 %v500_v30  ;;  %474 = vmatmul.msk.bf16.vlgmr.msra.gmra.mxu3 %vm62_vm0, %v649_v26  ;;  %v539_v52 = vor.u32 %v569_v49, %v536_v50  ;;  %v542_v53 = vld [vmem:[%s789_s0 + $0xb0] sm:$0xf]  ;;  %v571_v54 = vld [vmem:[%s789_s0 + $0xb8] sm:$0xf0]  ;;  %v507_v55 = vld [vmem:[%s789_s0 + $0x80] sm:$0xf]  ;;  %v461_v56 = vor.u32 %v556_v48, %v460_v47 }
   0xe   :  { %258 = vmatpush.bf16.msrb.mxu3 %v504_v34  ;;  %169 = vmatpush.bf16.msrb.mxu0 %v469_v35  ;;  %v543_v57 = vor.u32 %v571_v54, %v542_v53  ;;  %v565_v58 = vld [vmem:[%s789_s0 + $0x88] sm:$0xf0]  ;;  %v534_v59 = vld [vmem:[%s789_s0 + $0xa8] sm:$0xf]  ;;  %v570_v60 = vld [vmem:[%s789_s0 + $0xb0] sm:$0xf0] }
   0xf   :  { %183 = vmatpush.bf16.msrb.mxu1 %v473_v39  ;;  %v508_v61 = vor.u32 %v565_v58, %v507_v55  ;;  %v535_v62 = vor.u32 %v570_v60, %v534_v59  ;;  %v566_v63 = vld [vmem:[%s789_s0 + $0x94] sm:$0xf]  ;;  %v524_v0 = vld [vmem:[%s789_s0 + $0x9c] sm:$0xf0]  ;;  %v530_v1 = vld [vmem:[%s789_s0 + $0x98] sm:$0xf] }
  0x10   :  { %v527_v2 = vor.u32 %v566_v63, %v524_v0  ;;  %v568_v3 = vld [vmem:[%s789_s0 + $0xa0] sm:$0xf0]  ;;  %v495_v4 = vld [vmem:[%s789_s0 + $0x68] sm:$0xf]  ;;  %v562_v5 = vld [vmem:[%s789_s0 + $0x70] sm:$0xf0] }
  0x11   :  { %245 = vmatpush.bf16.msrb.mxu2 %v488_v43  ;;  %v531_v6 = vor.u32 %v568_v3, %v530_v1  ;;  %v522_v7 = vld [vmem:[%s789_s0 + $0x90] sm:$0xf]  ;;  %v567_v8 = vld [vmem:[%s789_s0 + $0x98] sm:$0xf0]  ;;  %v496_v9 = vor.u32 %v562_v5, %v495_v4  ;;  %v375_v10 = vld [vmem:[%s791_s2] sm:$0xff]  ;;  %v574_v12 = vmov 0  }
  0x12   :  { %259 = vmatpush.bf16.msrb.mxu3 %v492_v44  ;;  %170 = vmatpush.bf16.msrb.mxu0 %v457_v51  ;;  %v523_v11 = vor.u32 %v567_v8, %v522_v7  ;;  %v376_v13 = vld [vmem:[%s791_s2 + $0x8] sm:$0x3] }
  0x13   :  { %184 = vmatpush.bf16.msrb.mxu1 %v461_v56  ;;  %573 = vset.pattern.permute.xlu0 %v574_v12 }
  0x14   :  { %379 = vperm.xlu0 %573, %v375_v10  }
  0x15   :  { %347 = vmatpush.bf16.msra.mxu2 %v539_v52 }
  0x16   :  { %361 = vmatpush.bf16.msra.mxu3 %v543_v57  ;;  %272 = vmatpush.bf16.msra.mxu0 %v508_v61 }
  0x17   :  { %333 = vmatpush.bf16.msra.mxu1 %v535_v62 }
  0x19   :  { %348 = vmatpush.bf16.msra.mxu2 %v527_v2 }
  0x1a   :  { %362 = vmatpush.bf16.msra.mxu3 %v531_v6  ;;  %273 = vmatpush.bf16.msra.mxu0 %v496_v9 }
  0x1b   :  { %334 = vmatpush.bf16.msra.mxu1 %v523_v11  ;;  %475 = vmatmul.msk.bf16.vlgmr.msrb.gmra.mxu0 %vm62_vm0, %v649_v26 }
  0x1c   :  { %476 = vmatmul.msk.bf16.vlgmr.msrb.gmra.mxu1 %vm62_vm0, %v649_v26  ;;  %509 = vmatmul.msk.bf16.vlgmr.msrb.gmra.mxu2 %vm62_vm0, %v649_v26 }
  0x1d   :  { %510 = vmatmul.msk.bf16.vlgmr.msrb.gmra.mxu3 %vm62_vm0, %v649_v26  ;;  %384 = vperm.xlu0 %573, %v376_v13  }
  0x2b   :  { %511 = vmatmul.msk.bf16.vlgmr.msra.gmra.mxu0 %vm62_vm0, %v649_v26 }
  0x2c   :  { %544 = vmatmul.msk.bf16.vlgmr.msra.gmra.mxu1 %vm62_vm0, %v649_v26  ;;  %545 = vmatmul.msk.bf16.vlgmr.msra.gmra.mxu2 %vm62_vm0, %v649_v26 }
  0x2d   :  { %546 = vmatmul.msk.bf16.vlgmr.msra.gmra.mxu3 %vm62_vm0, %v649_v26 }
  0x86   :  { %v380_v37 = vpop.permute.xlu0 %379 }
  0x88   :  { %v75_v14 = vpop.f32.mrf.mxu0 }
  0x89   :  { %v89_v15 = vpop.f32.mrf.mxu1 }
  0x8f   :  { %v103_v16 = vpop.f32.mrf.mxu2  ;;  %v385_v60 = vpop.permute.xlu0 %384 }
  0x90   :  { %v158_v17 = vpop.f32.mrf.mxu3  ;;  %v77_v18 = vpop.f32.mrf.mxu0 }
  0x91   :  { %v91_v19 = vpop.f32.mrf.mxu1  ;;  %v191_v30 = vmax.f32 %v75_v14, %v158_v17 }
  0x97   :  { %v105_v20 = vpop.f32.mrf.mxu2 }
  0x98   :  { %v160_v21 = vpop.f32.mrf.mxu3  ;;  %v172_v22 = vpop.f32.mrf.mxu0 }
  0x99   :  { %v186_v23 = vpop.f32.mrf.mxu1  ;;  %v192_v34 = vmax.f32 %v89_v15, %v172_v22  ;;  %v194_v41 = vmax.f32 %v77_v18, %v160_v21 }
  0x9a   :  { %v193_v36 = vmax.f32 %v103_v16, %v186_v23 }
  0x9f   :  { %v247_v24 = vpop.f32.mrf.mxu2 }
  0xa0   :  { %v261_v25 = vpop.f32.mrf.mxu3  ;;  %v174_v27 = vpop.f32.mrf.mxu0  ;;  %v280_v33 = vmax.f32 %v191_v30, %v247_v24 }
  0xa1   :  { %v188_v28 = vpop.f32.mrf.mxu1  ;;  %v281_v38 = vmax.f32 %v192_v34, %v261_v25  ;;  %v195_v50 = vmax.f32 %v91_v19, %v174_v27 }
  0xa2   :  { %v196_v55 = vmax.f32 %v105_v20, %v188_v28 }
  0xa7   :  { %v249_v29 = vpop.f32.mrf.mxu2 }
  0xa8   :  { %v263_v31 = vpop.f32.mrf.mxu3  ;;  %v275_v26 = vpop.f32.mrf.mxu0  ;;  %v283_v47 = vmax.f32 %v194_v41, %v249_v29 }
  0xa9   :  { %v336_v32 = vpop.f32.mrf.mxu1  ;;  %v282_v39 = vmax.f32 %v193_v36, %v275_v26  ;;  %v284_v57 = vmax.f32 %v195_v50, %v263_v31 }
  0xaa   :  { %v369_v35 = vmax.f32 %v280_v33, %v336_v32 }
  0xac   :  { %v387_v42 = vadd.f32 %v380_v37, %v369_v35 }
  0xae   :  { %v393_v51 = vmax.f32 %v387_v42, 0.0 }
  0xaf   :  { %v350_v40 = vpop.f32.mrf.mxu2 }
  0xb0   :  { %v370_v43 = vmax.f32 %v281_v38, %v350_v40  ;;  %v364_v44 = vpop.f32.mrf.mxu3  ;;  %v277_v53 = vpop.f32.mrf.mxu0 }
  0xb1   :  { %v371_v45 = vmax.f32 %v282_v39, %v364_v44  ;;  %v338_v46 = vpop.f32.mrf.mxu1  ;;  %v285_v61 = vmax.f32 %v196_v55, %v277_v53 }
  0xb2   :  { %v388_v48 = vadd.f32 %v380_v37, %v370_v43  ;;  %v372_v54 = vmax.f32 %v283_v47, %v338_v46 }
  0xb3   :  { %v389_v49 = vadd.f32 %v380_v37, %v371_v45 }
  0xb4   :  { %v394_v52 = vmax.f32 %v388_v48, 0.0  ;;  %v390_v63 = vadd.f32 %v385_v60, %v372_v54 }
  0xb5   :  { %v395_v56 = vmax.f32 %v389_v49, 0.0 }
  0xb6   :  { %v399_v58 = vpack.c.bf16 %v394_v52, %v393_v51  ;;  %v396_v5 = vmax.f32 %v390_v63, 0.0 }
  0xb7   :  { %v400_v59 = vpack.c.bf16 %v395_v56, %v395_v56  ;;  %v352_v62 = vpop.f32.mrf.mxu2 }
  0xb8   :  { %403 = vst [vmem:[%s792_s3] sm:$0xff] %v399_v58  ;;  %v373_v0 = vmax.f32 %v284_v57, %v352_v62  ;;  %v366_v1 = vpop.f32.mrf.mxu3 }
  0xb9   :  { %404 = vst [vmem:[%s792_s3 + $0x8] sm:$0xf] %v400_v59  ;;  %v374_v2 = vmax.f32 %v285_v61, %v366_v1 }
  0xba   :  { %v391_v3 = vadd.f32 %v385_v60, %v373_v0 }
  0xbb   :  { %v392_v4 = vadd.f32 %v385_v60, %v374_v2 }
  0xbc   :  { %v397_v6 = vmax.f32 %v391_v3, 0.0 }
  0xbd   :  { %v398_v7 = vmax.f32 %v392_v4, 0.0 }
  0xbe   :  { %v401_v8 = vpack.c.bf16 %v397_v6, %v396_v5 }
  0xbf   :  { %v402_v9 = vpack.c.bf16 %v398_v7, %v398_v7 }
  0xc0   :  { %405 = vst [vmem:[%s792_s3 + $0xc] sm:$0x11] %v401_v8 }
  0xc1   :  { %406 = vst [vmem:[%s792_s3 + $0x14] sm:$0x1] %v402_v9 }

// kernel: net_forward.4
= control target key start
LH: loop header
LB: loop body
LE: loop exit
PB: predicated region body
PF: predicated region fallthrough
CT: control target
= control target key end

     0   :  { %s1425_s0 = inlined_call_operand.vmem [shape: bf16[4,256,128], index: 0, kind: input, shape index: {}]   ;;  %s1426_s1 = inlined_call_operand.vmem [shape: bf16[20,256], index: 1, kind: input, shape index: {}]   ;;  %s1427_s2 = inlined_call_operand.vmem [shape: f32[20,1], index: 2, kind: input, shape index: {}]   ;;  %s1428_s3 = inlined_call_operand.vmem [shape: bf16[20,128], index: 3, kind: output, shape index: {}]  }
   0x1   :  { %v1105_v0 = vld [vmem:[%s1425_s0 + $0x38] sm:$0xff]  ;;  %v1104_v4 = vld [vmem:[%s1425_s0 + $0x30] sm:$0xff]  ;;  %v1103_v8 = vld [vmem:[%s1425_s0 + $0x28] sm:$0xff] }
   0x2   :  { %v1113_v1 = vld [vmem:[%s1425_s0 + $0x78] sm:$0xff]  ;;  %162 = vmatpush.bf16.msra.mxu0 %v1105_v0  ;;  %v1112_v5 = vld [vmem:[%s1425_s0 + $0x70] sm:$0xff]  ;;  %v1111_v9 = vld [vmem:[%s1425_s0 + $0x68] sm:$0xff] }
   0x3   :  { %v1121_v2 = vld [vmem:[%s1425_s0 + $0xb8] sm:$0xff]  ;;  %180 = vmatpush.bf16.msra.mxu1 %v1113_v1  ;;  %v1120_v6 = vld [vmem:[%s1425_s0 + $0xb0] sm:$0xff]  ;;  %v1119_v10 = vld [vmem:[%s1425_s0 + $0xa8] sm:$0xff] }
   0x4   :  { %v1129_v3 = vld [vmem:[%s1425_s0 + $0xf8] sm:$0xff]  ;;  %327 = vmatpush.bf16.msra.mxu2 %v1121_v2  ;;  %v1128_v7 = vld [vmem:[%s1425_s0 + $0xf0] sm:$0xff]  ;;  %v1127_v11 = vld [vmem:[%s1425_s0 + $0xe8] sm:$0xff] }
   0x5   :  { %345 = vmatpush.bf16.msra.mxu3 %v1129_v3  ;;  %v1102_v12 = vld [vmem:[%s1425_s0 + $0x20] sm:$0xff]  ;;  %v1101_v16 = vld [vmem:[%s1425_s0 + $0x18] sm:$0xff]  ;;  %v1100_v20 = vld [vmem:[%s1425_s0 + $0x10] sm:$0xff] }
   0x6   :  { %163 = vmatpush.bf16.msra.mxu0 %v1104_v4  ;;  %v1110_v13 = vld [vmem:[%s1425_s0 + $0x60] sm:$0xff]  ;;  %v1109_v17 = vld [vmem:[%s1425_s0 + $0x58] sm:$0xff]  ;;  %v1108_v21 = vld [vmem:[%s1425_s0 + $0x50] sm:$0xff] }
   0x7   :  { %181 = vmatpush.bf16.msra.mxu1 %v1112_v5  ;;  %v1118_v14 = vld [vmem:[%s1425_s0 + $0xa0] sm:$0xff]  ;;  %v1117_v18 = vld [vmem:[%s1425_s0 + $0x98] sm:$0xff]  ;;  %v1116_v22 = vld [vmem:[%s1425_s0 + $0x90] sm:$0xff] }
   0x8   :  { %328 = vmatpush.bf16.msra.mxu2 %v1120_v6  ;;  %v1126_v15 = vld [vmem:[%s1425_s0 + $0xe0] sm:$0xff]  ;;  %v1125_v19 = vld [vmem:[%s1425_s0 + $0xd8] sm:$0xff]  ;;  %v1124_v23 = vld [vmem:[%s1425_s0 + $0xd0] sm:$0xff] }
   0x9   :  { %346 = vmatpush.bf16.msra.mxu3 %v1128_v7  ;;  %v1099_v24 = vld [vmem:[%s1425_s0 + $0x8] sm:$0xff]  ;;  %v1098_v28 = vld [vmem:[%s1425_s0] sm:$0xff]  ;;  %v1153_v36 = vld [vmem:[%s1425_s0 + $0x1b8] sm:$0xff]  ;;  %v1170_v7 = vmov 0  }
   0xa   :  { %164 = vmatpush.bf16.msra.mxu0 %v1103_v8  ;;  %v1107_v25 = vld [vmem:[%s1425_s0 + $0x48] sm:$0xff]  ;;  %v1106_v29 = vld [vmem:[%s1425_s0 + $0x40] sm:$0xff]  ;;  %v1161_v37 = vld [vmem:[%s1425_s0 + $0x1f8] sm:$0xff]  ;;  %1168 = vset.pattern.permute.xlu0 %v1170_v7 }
   0xb   :  { %182 = vmatpush.bf16.msra.mxu1 %v1111_v9  ;;  %v1115_v26 = vld [vmem:[%s1425_s0 + $0x88] sm:$0xff]  ;;  %v738_v30 = vld [vmem:[%s1426_s1] sm:$0xf]  ;;  %v1096_v32 = vld [vmem:[%s1426_s1 + $0x4] sm:$0xf]  ;;  %1169 = vset.pattern.permute.xlu1 %v1170_v7 }
   0xc   :  { %329 = vmatpush.bf16.msra.mxu2 %v1119_v10  ;;  %v1123_v27 = vld [vmem:[%s1425_s0 + $0xc8] sm:$0xff]  ;;  %v1114_v34 = vld [vmem:[%s1425_s0 + $0x80] sm:$0xff]  ;;  %v1137_v40 = vld [vmem:[%s1425_s0 + $0x138] sm:$0xff] }
   0xd   :  { %347 = vmatpush.bf16.msra.mxu3 %v1127_v11  ;;  %v1097_v31 = vld [vmem:[%s1426_s1 + $0x4] sm:$0xf0]  ;;  %v740_v33 = vld [vmem:[%s1426_s1 + $0x8] sm:$0xf0]  ;;  %v1122_v35 = vld [vmem:[%s1425_s0 + $0xc0] sm:$0xff] }
   0xe   :  { %165 = vmatpush.bf16.msra.mxu0 %v1102_v12  ;;  %v1305_v38 = vor.u32 %v1097_v31, %v738_v30  ;;  %v1307_v39 = vor.u32 %v1096_v32, %v740_v33  ;;  %v1145_v41 = vld [vmem:[%s1425_s0 + $0x178] sm:$0xff]  ;;  %v1152_v42 = vld [vmem:[%s1425_s0 + $0x1b0] sm:$0xff]  ;;  %v1151_v46 = vld [vmem:[%s1425_s0 + $0x1a8] sm:$0xff] }
   0xf   :  { %183 = vmatpush.bf16.msra.mxu1 %v1110_v13  ;;  %v1160_v43 = vld [vmem:[%s1425_s0 + $0x1f0] sm:$0xff]  ;;  %v1159_v47 = vld [vmem:[%s1425_s0 + $0x1e8] sm:$0xff]  ;;  %v1150_v51 = vld [vmem:[%s1425_s0 + $0x1a0] sm:$0xff] }
  0x10   :  { %330 = vmatpush.bf16.msra.mxu2 %v1118_v14  ;;  %v1136_v44 = vld [vmem:[%s1425_s0 + $0x130] sm:$0xff]  ;;  %v1135_v49 = vld [vmem:[%s1425_s0 + $0x128] sm:$0xff]  ;;  %v1158_v52 = vld [vmem:[%s1425_s0 + $0x1e0] sm:$0xff] }
  0x11   :  { %348 = vmatpush.bf16.msra.mxu3 %v1126_v15  ;;  %v1144_v45 = vld [vmem:[%s1425_s0 + $0x170] sm:$0xff]  ;;  %v1143_v50 = vld [vmem:[%s1425_s0 + $0x168] sm:$0xff]  ;;  %v1134_v55 = vld [vmem:[%s1425_s0 + $0x120] sm:$0xff] }
  0x12   :  { %166 = vmatpush.bf16.msra.mxu0 %v1101_v16  ;;  %v16_v48 = vld [vmem:[%s1426_s1 + $0x10] sm:$0x33]  ;;  %v1142_v56 = vld [vmem:[%s1425_s0 + $0x160] sm:$0xff]  ;;  %v1149_v57 = vld [vmem:[%s1425_s0 + $0x198] sm:$0xff] }
  0x13   :  { %184 = vmatpush.bf16.msra.mxu1 %v1109_v17  ;;  %v56_v53 = vunpack.c.l.b16 %v16_v48  ;;  %v57_v54 = vunpack.c.h.b16 %v16_v48  ;;  %v1157_v58 = vld [vmem:[%s1425_s0 + $0x1d8] sm:$0xff]  ;;  %v1148_v63 = vld [vmem:[%s1425_s0 + $0x190] sm:$0xff]  ;;  %v702_v3 = vld [vmem:[%s1427_s2] sm:$0xff] }
  0x14   :  { %331 = vmatpush.bf16.msra.mxu2 %v1117_v18  ;;  %v1133_v61 = vld [vmem:[%s1425_s0 + $0x118] sm:$0xff]  ;;  %v1156_v0 = vld [vmem:[%s1425_s0 + $0x1d0] sm:$0xff]  ;;  %v1147_v5 = vld [vmem:[%s1425_s0 + $0x188] sm:$0xff]  ;;  %707 = vperm.xlu0 %1168, %v702_v3  }
  0x15   :  { %349 = vmatpush.bf16.msra.mxu3 %v1125_v19  ;;  %v60_v59 = vpack.c.b16 %v56_v53, %v56_v53  ;;  %v61_v60 = vpack.c.b16 %v57_v54, %v57_v54  ;;  %v1141_v62 = vld [vmem:[%s1425_s0 + $0x158] sm:$0xff]  ;;  %v1132_v1 = vld [vmem:[%s1425_s0 + $0x110] sm:$0xff]  ;;  %v1155_v6 = vld [vmem:[%s1425_s0 + $0x1c8] sm:$0xff] }
  0x16   :  { %167 = vmatpush.bf16.msra.mxu0 %v1100_v20  ;;  %v1140_v2 = vld [vmem:[%s1425_s0 + $0x150] sm:$0xff]  ;;  %v1131_v8 = vld [vmem:[%s1425_s0 + $0x108] sm:$0xff]  ;;  %v1146_v10 = vld [vmem:[%s1425_s0 + $0x180] sm:$0xff] }
  0x17   :  { %185 = vmatpush.bf16.msra.mxu1 %v1108_v21  ;;  %v704_v4 = vld [vmem:[%s1427_s2 + $0x10] sm:$0xf]  ;;  %v1139_v9 = vld [vmem:[%s1425_s0 + $0x148] sm:$0xff]  ;;  %v1154_v11 = vld [vmem:[%s1425_s0 + $0x1c0] sm:$0xff] }
  0x18   :  { %332 = vmatpush.bf16.msra.mxu2 %v1116_v22  ;;  %717 = vperm.xlu1 %1169, %v704_v4   ;;  %v1130_v12 = vld [vmem:[%s1425_s0 + $0x100] sm:$0xff]  ;;  %v703_v14 = vld [vmem:[%s1427_s2 + $0x8] sm:$0xff] }
  0x19   :  { %350 = vmatpush.bf16.msra.mxu3 %v1124_v23  ;;  %v1138_v13 = vld [vmem:[%s1425_s0 + $0x140] sm:$0xff] }
  0x1a   :  { %168 = vmatpush.bf16.msra.mxu0 %v1099_v24 }
  0x1b   :  { %186 = vmatpush.bf16.msra.mxu1 %v1107_v25 }
  0x1c   :  { %333 = vmatpush.bf16.msra.mxu2 %v1115_v26  ;;  %712 = vperm.xlu0 %1168, %v703_v14  }
  0x1d   :  { %351 = vmatpush.bf16.msra.mxu3 %v1123_v27 }
  0x1e   :  { %169 = vmatpush.bf16.msra.mxu0 %v1098_v28 }
  0x1f   :  { %187 = vmatpush.bf16.msra.mxu1 %v1106_v29 }
  0x20   :  { %334 = vmatpush.bf16.msra.mxu2 %v1114_v34 }
  0x21   :  { %352 = vmatpush.bf16.msra.mxu3 %v1122_v35  ;;  %170 = vmatmul.bf16.vlgmr.msra.gmra.mxu0 %v1305_v38 }
  0x22   :  { %188 = vmatmul.bf16.vlgmr.msra.gmra.mxu1 %v1307_v39  ;;  %495 = vmatpush.bf16.msrb.mxu0 %v1137_v40 }
  0x23   :  { %335 = vmatmul.bf16.vlgmr.msra.gmra.mxu2 %v1305_v38  ;;  %513 = vmatpush.bf16.msrb.mxu1 %v1145_v41 }
  0x24   :  { %663 = vmatpush.bf16.msrb.mxu2 %v1153_v36  ;;  %353 = vmatmul.bf16.vlgmr.msra.gmra.mxu3 %v1307_v39 }
  0x25   :  { %681 = vmatpush.bf16.msrb.mxu3 %v1161_v37 }
  0x26   :  { %496 = vmatpush.bf16.msrb.mxu0 %v1136_v44 }
  0x27   :  { %514 = vmatpush.bf16.msrb.mxu1 %v1144_v45 }
  0x28   :  { %664 = vmatpush.bf16.msrb.mxu2 %v1152_v42 }
  0x29   :  { %682 = vmatpush.bf16.msrb.mxu3 %v1160_v43 }
  0x2a   :  { %497 = vmatpush.bf16.msrb.mxu0 %v1135_v49 }
  0x2b   :  { %515 = vmatpush.bf16.msrb.mxu1 %v1143_v50 }
  0x2c   :  { %665 = vmatpush.bf16.msrb.mxu2 %v1151_v46 }
  0x2d   :  { %683 = vmatpush.bf16.msrb.mxu3 %v1159_v47 }
  0x2e   :  { %498 = vmatpush.bf16.msrb.mxu0 %v1134_v55 }
  0x2f   :  { %516 = vmatpush.bf16.msrb.mxu1 %v1142_v56 }
  0x30   :  { %666 = vmatpush.bf16.msrb.mxu2 %v1150_v51 }
  0x31   :  { %684 = vmatpush.bf16.msrb.mxu3 %v1158_v52  ;;  %175 = vmatmul.bf16.gmra.mxu0 %v60_v59 }
  0x32   :  { %193 = vmatmul.bf16.gmra.mxu1 %v61_v60  ;;  %499 = vmatpush.bf16.msrb.mxu0 %v1133_v61 }
  0x33   :  { %340 = vmatmul.bf16.gmra.mxu2 %v60_v59  ;;  %517 = vmatpush.bf16.msrb.mxu1 %v1141_v62 }
  0x34   :  { %667 = vmatpush.bf16.msrb.mxu2 %v1149_v57  ;;  %358 = vmatmul.bf16.gmra.mxu3 %v61_v60 }
  0x35   :  { %685 = vmatpush.bf16.msrb.mxu3 %v1157_v58 }
  0x36   :  { %500 = vmatpush.bf16.msrb.mxu0 %v1132_v1 }
  0x37   :  { %518 = vmatpush.bf16.msrb.mxu1 %v1140_v2 }
  0x38   :  { %668 = vmatpush.bf16.msrb.mxu2 %v1148_v63 }
  0x39   :  { %686 = vmatpush.bf16.msrb.mxu3 %v1156_v0 }
  0x3a   :  { %501 = vmatpush.bf16.msrb.mxu0 %v1131_v8 }
  0x3b   :  { %519 = vmatpush.bf16.msrb.mxu1 %v1139_v9 }
  0x3c   :  { %669 = vmatpush.bf16.msrb.mxu2 %v1147_v5 }
  0x3d   :  { %687 = vmatpush.bf16.msrb.mxu3 %v1155_v6 }
  0x3e   :  { %502 = vmatpush.bf16.msrb.mxu0 %v1130_v12 }
  0x3f   :  { %520 = vmatpush.bf16.msrb.mxu1 %v1138_v13 }
  0x40   :  { %670 = vmatpush.bf16.msrb.mxu2 %v1146_v10 }
  0x41   :  { %688 = vmatpush.bf16.msrb.mxu3 %v1154_v11  ;;  %503 = vmatmul.bf16.vlgmr.msrb.gmra.mxu0 %v1305_v38 }
  0x42   :  { %521 = vmatmul.bf16.vlgmr.msrb.gmra.mxu1 %v1307_v39 }
  0x43   :  { %671 = vmatmul.bf16.vlgmr.msrb.gmra.mxu2 %v1305_v38 }
  0x44   :  { %689 = vmatmul.bf16.vlgmr.msrb.gmra.mxu3 %v1307_v39 }
  0x51   :  { %508 = vmatmul.bf16.gmra.mxu0 %v60_v59 }
  0x52   :  { %526 = vmatmul.bf16.gmra.mxu1 %v61_v60 }
  0x53   :  { %676 = vmatmul.bf16.gmra.mxu2 %v60_v59 }
  0x54   :  { %694 = vmatmul.bf16.gmra.mxu3 %v61_v60 }
  0x86   :  { %v708_v34 = vpop.permute.xlu0 %707 }
  0x8a   :  { %v718_v8 = vpop.permute.xlu1 %717 }
  0x8e   :  { %v713_v55 = vpop.permute.xlu0 %712 }
  0x9e   :  { %v171_v15 = vpop.f32.mrf.mxu0 }
  0x9f   :  { %v189_v16 = vpop.f32.mrf.mxu1 }
  0xa0   :  { %v190_v37 = vadd.f32 %v189_v16, %v171_v15 }
  0xa6   :  { %v336_v17 = vpop.f32.mrf.mxu2  ;;  %v173_v19 = vpop.f32.mrf.mxu0 }
  0xa7   :  { %v354_v18 = vpop.f32.mrf.mxu3  ;;  %v191_v20 = vpop.f32.mrf.mxu1 }
  0xa8   :  { %v355_v33 = vadd.f32 %v354_v18, %v336_v17  ;;  %v192_v44 = vadd.f32 %v191_v20, %v173_v19 }
  0xaa   :  { %v363_v41 = vmax.f32 %v190_v37, %v355_v33 }
  0xae   :  { %v338_v21 = vpop.f32.mrf.mxu2  ;;  %v176_v23 = vpop.f32.mrf.mxu0 }
  0xaf   :  { %v356_v22 = vpop.f32.mrf.mxu3  ;;  %v194_v24 = vpop.f32.mrf.mxu1 }
  0xb0   :  { %v357_v42 = vadd.f32 %v356_v22, %v338_v21  ;;  %v195_v59 = vadd.f32 %v194_v24, %v176_v23 }
  0xb2   :  { %v364_v47 = vmax.f32 %v192_v44, %v357_v42 }
  0xb6   :  { %v341_v25 = vpop.f32.mrf.mxu2  ;;  %v178_v27 = vpop.f32.mrf.mxu0 }
  0xb7   :  { %v359_v26 = vpop.f32.mrf.mxu3  ;;  %v196_v28 = vpop.f32.mrf.mxu1 }
  0xb8   :  { %v360_v56 = vadd.f32 %v359_v26, %v341_v25 }
  0xba   :  { %v365_v62 = vmax.f32 %v195_v59, %v360_v56 }
  0xbe   :  { %v343_v29 = vpop.f32.mrf.mxu2  ;;  %v504_v31 = vpop.f32.mrf.mxu0 }
  0xbf   :  { %v361_v30 = vpop.f32.mrf.mxu3  ;;  %v522_v32 = vpop.f32.mrf.mxu1 }
  0xc0   :  { %v523_v38 = vadd.f32 %v522_v32, %v504_v31 }
  0xc2   :  { %v531_v45 = vmax.f32 %v363_v41, %v523_v38 }
  0xc6   :  { %v672_v35 = vpop.f32.mrf.mxu2  ;;  %v506_v39 = vpop.f32.mrf.mxu0 }
  0xc7   :  { %v690_v36 = vpop.f32.mrf.mxu3  ;;  %v524_v40 = vpop.f32.mrf.mxu1 }
  0xc8   :  { %v691_v43 = vadd.f32 %v690_v36, %v672_v35  ;;  %v525_v46 = vadd.f32 %v524_v40, %v506_v39 }
  0xca   :  { %v699_v48 = vmax.f32 %v531_v45, %v691_v43  ;;  %v532_v51 = vmax.f32 %v364_v47, %v525_v46 }
  0xcc   :  { %v720_v57 = vadd.f32 %v708_v34, %v699_v48 }
  0xce   :  { %v674_v49 = vpop.f32.mrf.mxu2  ;;  %v509_v53 = vpop.f32.mrf.mxu0  ;;  %v723_v63 = vmax.f32 %v720_v57, 0.0 }
  0xcf   :  { %v692_v50 = vpop.f32.mrf.mxu3  ;;  %v527_v54 = vpop.f32.mrf.mxu1 }
  0xd0   :  { %v693_v52 = vadd.f32 %v692_v50, %v674_v49  ;;  %v528_v60 = vadd.f32 %v527_v54, %v509_v53 }
  0xd2   :  { %v700_v58 = vmax.f32 %v532_v51, %v693_v52  ;;  %v533_v3 = vmax.f32 %v365_v62, %v528_v60 }
  0xd4   :  { %v721_v61 = vadd.f32 %v713_v55, %v700_v58 }
  0xd6   :  { %v724_v0 = vmax.f32 %v721_v61, 0.0  ;;  %v677_v1 = vpop.f32.mrf.mxu2  ;;  %v511_v6 = vpop.f32.mrf.mxu0 }
  0xd7   :  { %v695_v2 = vpop.f32.mrf.mxu3  ;;  %v529_v7 = vpop.f32.mrf.mxu1 }
  0xd8   :  { %v1165_v4 = vpack.c.bf16 %v724_v0, %v723_v63  ;;  %v696_v5 = vadd.f32 %v695_v2, %v677_v1 }
  0xda   :  { %v701_v9 = vmax.f32 %v533_v3, %v696_v5  ;;  %1166 = vst [vmem:[%s1428_s3] sm:$0xff] %v1165_v4  }
  0xdc   :  { %v722_v10 = vadd.f32 %v718_v8, %v701_v9 }
  0xde   :  { %v725_v11 = vmax.f32 %v722_v10, 0.0  ;;  %v679_v12 = vpop.f32.mrf.mxu2 }
  0xdf   :  { %v697_v13 = vpop.f32.mrf.mxu3 }
  0xe0   :  { %v728_v14 = vpack.c.bf16 %v725_v11, %v725_v11 }
  0xe2   :  { %731 = vst [vmem:[%s1428_s3 + $0x8] sm:$0x3] %v728_v14 }

// kernel: net_forward.5
= control target key start
LH: loop header
LB: loop body
LE: loop exit
PB: predicated region body
PF: predicated region fallthrough
CT: control target
= control target key end

     0   :  { %vm197_vm0 = vcmask 523264   ;;  %s615_s1 = inlined_call_operand.vmem [shape: bf16[320,128], index: 1, kind: input, shape index: {}]   ;;  %s616_s3 = inlined_call_operand.vmem [shape: bf16[128,128], index: 3, kind: input, shape index: {}]   ;;  %s617_s0 = inlined_call_operand.vmem [shape: bf16[8,320], index: 0, kind: input, shape index: {}]   ;;  %s618_s2 = inlined_call_operand.vmem [shape: f32[1,128], index: 2, kind: input, shape index: {}]   ;;  %s619_s4 = inlined_call_operand.vmem [shape: f32[1,128], index: 4, kind: input, shape index: {}]   ;;  %s620_s5 = inlined_call_operand.vmem [shape: f32[8,128], index: 5, kind: output, shape index: {}]  }
   0x1   :  { %v459_v0 = vld [vmem:[%s615_s1 + $0x38] sm:$0xff]  ;;  %v458_v3 = vld [vmem:[%s615_s1 + $0x30] sm:$0xff]  ;;  %v457_v6 = vld [vmem:[%s615_s1 + $0x28] sm:$0xff] }
   0x2   :  { %v467_v1 = vld [vmem:[%s615_s1 + $0x78] sm:$0xff]  ;;  %201 = vmatpush.bf16.msra.mxu0 %v459_v0  ;;  %v466_v4 = vld [vmem:[%s615_s1 + $0x70] sm:$0xff]  ;;  %v465_v7 = vld [vmem:[%s615_s1 + $0x68] sm:$0xff] }
   0x3   :  { %v471_v2 = vld [vmem:[%s615_s1 + $0x98] sm:$0xff]  ;;  %214 = vmatpush.bf16.msra.mxu1 %v467_v1  ;;  %v470_v5 = vld [vmem:[%s615_s1 + $0x90] sm:$0xff]  ;;  %v469_v8 = vld [vmem:[%s615_s1 + $0x88] sm:$0xff] }
   0x4   :  { %231 = vmatpush.bf16.msra.mxu2 %v471_v2  ;;  %v479_v9 = vld [vmem:[%s616_s3 + $0x38] sm:$0xff]  ;;  %v22_v10 = vld [vmem:[%s617_s0 + $0x8] sm:$0xf]  ;;  %v478_v11 = vld [vmem:[%s616_s3 + $0x30] sm:$0xff] }
   0x5   :  { %310 = vmatpush.bf16.msra.mxu3 %v479_v9  ;;  %v456_v12 = vld [vmem:[%s615_s1 + $0x20] sm:$0xff]  ;;  %v71_v15 = vunpack.c.l.b16 %v22_v10  ;;  %v477_v16 = vld [vmem:[%s616_s3 + $0x28] sm:$0xff]  ;;  %v455_v17 = vld [vmem:[%s615_s1 + $0x18] sm:$0xff] }
   0x6   :  { %202 = vmatpush.bf16.msra.mxu0 %v458_v3  ;;  %v464_v13 = vld [vmem:[%s615_s1 + $0x60] sm:$0xff]  ;;  %v463_v18 = vld [vmem:[%s615_s1 + $0x58] sm:$0xff]  ;;  %v454_v21 = vld [vmem:[%s615_s1 + $0x10] sm:$0xff] }
   0x7   :  { %215 = vmatpush.bf16.msra.mxu1 %v466_v4  ;;  %v468_v14 = vld [vmem:[%s615_s1 + $0x80] sm:$0xff]  ;;  %v74_v19 = vpack.c.b16 %v71_v15, %v71_v15  ;;  %v462_v22 = vld [vmem:[%s615_s1 + $0x50] sm:$0xff]  ;;  %v453_v23 = vld [vmem:[%s615_s1 + $0x8] sm:$0xff] }
   0x8   :  { %232 = vmatpush.bf16.msra.mxu2 %v470_v5  ;;  %v476_v20 = vld [vmem:[%s616_s3 + $0x20] sm:$0xff]  ;;  %v461_v24 = vld [vmem:[%s615_s1 + $0x48] sm:$0xff]  ;;  %v475_v32 = vld [vmem:[%s616_s3 + $0x18] sm:$0xff] }
   0x9   :  { %311 = vmatpush.bf16.msra.mxu3 %v478_v11  ;;  %v21_v25 = vld [vmem:[%s617_s0] sm:$0xff]  ;;  %v474_v33 = vld [vmem:[%s616_s3 + $0x10] sm:$0xff]  ;;  %v473_v34 = vld [vmem:[%s616_s3 + $0x8] sm:$0xff] }
   0xa   :  { %203 = vmatpush.bf16.msra.mxu0 %v457_v6  ;;  %v69_v26 = vunpack.c.l.b16 %v21_v25  ;;  %v70_v27 = vunpack.c.h.b16 %v21_v25  ;;  %v452_v28 = vld [vmem:[%s615_s1] sm:$0xff] }
   0xb   :  { %216 = vmatpush.bf16.msra.mxu1 %v465_v7  ;;  %v460_v29 = vld [vmem:[%s615_s1 + $0x40] sm:$0xff] }
   0xc   :  { %233 = vmatpush.bf16.msra.mxu2 %v469_v8  ;;  %v72_v30 = vpack.c.b16 %v69_v26, %v69_v26  ;;  %v73_v31 = vpack.c.b16 %v70_v27, %v70_v27  ;;  %v472_v35 = vld [vmem:[%s616_s3] sm:$0xff] }
   0xd   :  { %312 = vmatpush.bf16.msra.mxu3 %v477_v16  ;;  %v480_v37 = vld [vmem:[%s618_s2] ss:$0 sm:$0xff] }
   0xe   :  { %204 = vmatpush.bf16.msra.mxu0 %v456_v12  ;;  %v481_v48 = vld [vmem:[%s619_s4] ss:$0 sm:$0xff] }
   0xf   :  { %217 = vmatpush.bf16.msra.mxu1 %v464_v13 }
  0x10   :  { %234 = vmatpush.bf16.msra.mxu2 %v468_v14 }
  0x11   :  { %313 = vmatpush.bf16.msra.mxu3 %v476_v20 }
  0x12   :  { %205 = vmatpush.bf16.msra.mxu0 %v455_v17 }
  0x13   :  { %218 = vmatpush.bf16.msra.mxu1 %v463_v18  ;;  %419 = vmatmul.msk.bf16.vlgmr.msra.gmra.mxu2 %vm197_vm0, %v74_v19 }
  0x15   :  { %314 = vmatpush.bf16.msra.mxu3 %v475_v32 }
  0x16   :  { %206 = vmatpush.bf16.msra.mxu0 %v454_v21 }
  0x17   :  { %219 = vmatpush.bf16.msra.mxu1 %v462_v22 }
  0x19   :  { %315 = vmatpush.bf16.msra.mxu3 %v474_v33 }
  0x1a   :  { %207 = vmatpush.bf16.msra.mxu0 %v453_v23 }
  0x1b   :  { %220 = vmatpush.bf16.msra.mxu1 %v461_v24 }
  0x1d   :  { %316 = vmatpush.bf16.msra.mxu3 %v473_v34 }
  0x1e   :  { %208 = vmatpush.bf16.msra.mxu0 %v452_v28 }
  0x1f   :  { %221 = vmatpush.bf16.msra.mxu1 %v460_v29 }
  0x21   :  { %209 = vmatmul.bf16.vlgmr.msra.gmra.mxu0 %v72_v30  ;;  %317 = vmatpush.bf16.msra.mxu3 %v472_v35 }
  0x22   :  { %222 = vmatmul.bf16.vlgmr.msra.gmra.mxu1 %v73_v31 }
  0x96   :  { %v236_v36 = vpop.f32.mrf.mxu2 }
  0x9e   :  { %v210_v38 = vpop.f32.mrf.mxu0  ;;  %v238_v41 = vpop.f32.mrf.mxu2 }
  0x9f   :  { %v223_v39 = vpop.f32.mrf.mxu1  ;;  %v211_v40 = vadd.f32 %v480_v37, %v210_v38 }
  0xa1   :  { %v224_v42 = vadd.f32 %v223_v39, %v211_v40 }
  0xa3   :  { %v237_v43 = vadd.f32 %v236_v36, %v224_v42 }
  0xa5   :  { %v240_v44 = vmax.f32 %v237_v43, 0.0 }
  0xa6   :  { %v212_v45 = vpop.f32.mrf.mxu0 }
  0xa7   :  { %v225_v46 = vpop.f32.mrf.mxu1  ;;  %v241_v47 = vpack.c.bf16 %v240_v44, %v240_v44 }
  0xa9   :  { %318 = vmatmul.bf16.vlgmr.msra.gmra.mxu3 %v241_v47 }
 0x12c   :  { %v319_v49 = vpop.f32.mrf.mxu3 }
 0x12d   :  { %v320_v50 = vadd.f32 %v481_v48, %v319_v49 }
 0x12f   :  { %323 = vmax.xlane.f32.xlu0 %v320_v50 }
 0x134   :  { %v321_v51 = vpop.f32.mrf.mxu3 }
 0x1a2   :  { %v324_v52 = vpop.xlane.xlu0 %323 }
 0x1a3   :  { %v325_v53 = vsub.f32 %v320_v50, %v324_v52 }
 0x1a5   :  { %v326_v54 = vmul.f32 1.442695, %v325_v53 }
 0x1a7   :  { %482 = vpow2.f32 %v326_v54 }
 0x1ad   :  { %v483_v55 = vpop.eup %482 }
 0x1ae   :  { %328 = vadd.xlane.f32.xlu0 %v483_v55 }
 0x221   :  { %v329_v56 = vpop.xlane.xlu0 %328 }
 0x222   :  { %484 = vlog2.f32 %v329_v56 }
 0x228   :  { %v485_v57 = vpop.eup %484 }
 0x229   :  { %v331_v58 = vmul.f32 0.6931472, %v485_v57 }
 0x22b   :  { %v332_v59 = vadd.f32 %v331_v58, %v324_v52 }
 0x22d   :  { %v333_v60 = vsub.f32 %v320_v50, %v332_v59 }
 0x22f   :  { %334 = vst [vmem:[%s620_s5] sm:$0xff] %v333_v60 }

</bundles_post_ra>
